<compile_context>
chip_gen: v5e
topology: v5e:2x2
jax: 0.10.0
libtpu: 0.0.40
codegen_flags: <defaults>
</compile_context>

<pallas_src>
import jax
import jax.numpy as jnp
from jax.experimental import pallas as pl
from jax.experimental.pallas import tpu as pltpu


def _round_up(x, m):
    return (x + m - 1) // m * m


def _branch_node_kernel(scale_ref, x_ref, w_ref, b_ref, o_ref):
    """One batch tile: z = x @ W + b ; out = sigmoid(-scale * z)."""
    scale = scale_ref[0, 0]                                    # runtime SMEM scalar
    z = jnp.dot(x_ref[...], w_ref[...],
                preferred_element_type=jnp.float32)            # MXU, f32 accumulate
    z = z + b_ref[...]                                         # (1, N) broadcast
    t = scale * z
    # Numerically stable sigmoid(-t) = 1 / (1 + exp(t)):
    #   e = exp(-|t|);  sigmoid(-t) = where(t >= 0, e, 1) / (1 + e)
    # (exp -> EUP slot; avoids exp overflow for large scale*z.)
    e = jnp.exp(-jnp.abs(t))
    num = jnp.where(t >= 0, e, 1.0)
    o_ref[...] = (num / (1.0 + e)).astype(o_ref.dtype)


def branch_node_net_forward(x, weight, bias, scale, *, tile_batch=None):
    """
    x: (B, P) f32, weight: (N, P) f32 (PyTorch Linear layout), bias: (N,) f32,
    scale: python float / 0-d array (runtime value, not baked into the trace).
    Returns (B, N) f32 = 1 / (1 + exp(scale * (x @ W.T + b))).
    """
    B, P = x.shape
    N, Pw = weight.shape
    assert P == Pw and bias.shape == (N,)

    # ---- layout glue (no lane padding, no dtype casts) ---------------------
    x = jnp.asarray(x, jnp.float32)
    w_t = jnp.asarray(weight, jnp.float32).T          # (P, N) for the MXU
    b2d = jnp.asarray(bias, jnp.float32).reshape(1, N)
    scale_arr = jnp.asarray(scale, jnp.float32).reshape(1, 1)

    # ---- batch tiling -------------------------------------------------------
    # Default: a single large tile (whole batch) -> no wrapper-side padding
    # copy and minimal per-step overhead.  Cap at 16K rows so double-buffered
    # (tb, P) f32 inputs + (tb, N) outputs stay ~1-2 MiB, far under the scoped
    # VMEM limit on every generation (incl. v7x's 32 MiB default / 64 MiB).
    MAX_TB = 16384
    if tile_batch is None:
        tb = B if B <= MAX_TB else MAX_TB
    else:
        tb = min(int(tile_batch), B)
    if tb != B:
        tb = max(8, _round_up(tb, 8))     # (8,128) rule on second-to-last dim

    if B % tb == 0:
        x_p, b_pad = x, B                 # common path: no padding copy at all
    else:
        # Rare fallback (only if a non-dividing tile size was requested).
        b_pad = _round_up(B, tb)
        x_p = jnp.zeros((b_pad, P), x.dtype).at[:B].set(x)

    grid = (b_pad // tb,)
    out = pl.pallas_call(
        _branch_node_kernel,
        out_shape=jax.ShapeDtypeStruct((b_pad, N), jnp.float32),
        grid=grid,
        in_specs=[
            pl.BlockSpec(memory_space=pltpu.MemorySpace.SMEM),   # scale scalar
            pl.BlockSpec((tb, P), lambda i: (i, 0)),             # x batch tile
            pl.BlockSpec((P, N), lambda i: (0, 0)),              # W (replicated)
            pl.BlockSpec((1, N), lambda i: (0, 0)),              # b (replicated)
        ],
        out_specs=pl.BlockSpec((tb, N), lambda i: (i, 0)),       # lane dim = N (full)
        compiler_params=pltpu.CompilerParams(
            dimension_semantics=("parallel",)),
    )(scale_arr, x_p, w_t, b2d)

    return out if b_pad == B else out[:B]


if __name__ == "__main__":
    # Module hyperparameters (consistent with branchNodeNet __init__).
    tree_depth = 3
    feat_num = 16                           # p
    scale = 5.0
    branch_node_num = 2 ** tree_depth - 1   # 7 (linear1 output width)
    batch = 8

    key = jax.random.PRNGKey(0)
    kx, kw, kb, kx2 = jax.random.split(key, 4)

    # Deterministic synthetic parameters (PyTorch-Linear-like uniform init).
    bound = 1.0 / (feat_num ** 0.5)
    weight = jax.random.uniform(kw, (branch_node_num, feat_num),
                                minval=-bound, maxval=bound, dtype=jnp.float32)
    bias = jax.random.uniform(kb, (branch_node_num,),
                              minval=-bound, maxval=bound, dtype=jnp.float32)

    def ref_forward(xv):
        z = xv @ weight.T + bias
        return 1.0 / (1.0 + jnp.exp(scale * z))

    # Tolerance covers possible bf16-pass MXU precision for f32 matmuls.
    TOL = 1e-2

    # 1) Small-batch run at module-consistent shapes (single tile, no padding).
    x_small = jax.random.normal(kx, (batch, feat_num), dtype=jnp.float32)
    out_small = jax.block_until_ready(
        branch_node_net_forward(x_small, weight, bias, scale))
    assert out_small.shape == (batch, branch_node_num)
    assert jnp.allclose(out_small, ref_forward(x_small), atol=TOL, rtol=TOL)

    # 2) Larger batch split into 2 tiles on the parallel grid axis (one per
    #    v7x TensorCore; on v5e/v6e they just run back-to-back).  2048 % 1024
    #    == 0, so no wrapper-side padding copy is made.
    big_batch = 2048
    x_big = jax.random.normal(kx2, (big_batch, feat_num), dtype=jnp.float32)
    out_big = jax.block_until_ready(
        branch_node_net_forward(x_big, weight, bias, scale, tile_batch=1024))
    assert out_big.shape == (big_batch, branch_node_num)
    assert jnp.allclose(out_big, ref_forward(x_big), atol=TOL, rtol=TOL)

    print("KERNEL_OK")
</pallas_src>

<mosaic_0001>
module attributes {stable_mosaic.version = 11 : i64} {
  func.func @_branch_node_kernel(%arg0: i32, %arg1: memref<1x1xf32, #tpu.memory_space<smem>>, %arg2: memref<8x16xf32, #tpu.memory_space<vmem>>, %arg3: memref<16x7xf32, #tpu.memory_space<vmem>>, %arg4: memref<1x7xf32, #tpu.memory_space<vmem>>, %arg5: memref<8x7xf32, #tpu.memory_space<vmem>>) attributes {dimension_semantics = [#tpu.dimension_semantics<parallel>], iteration_bounds = array<i64: 1>, scalar_prefetch = 0 : i64, scratch_operands = 0 : i64, tpu.core_type = #tpu.core_type<tc>, window_params = [{transform_indices = @transform_0, window_bounds = array<i64: 1, 1>}, {transform_indices = @transform_1, window_bounds = array<i64: 8, 16>}, {pipeline_mode = #tpu.pipeline_mode<synchronous>, transform_indices = @transform_2, window_bounds = array<i64: 16, 7>}, {pipeline_mode = #tpu.pipeline_mode<synchronous>, transform_indices = @transform_3, window_bounds = array<i64: 1, 7>}, {transform_indices = @transform_4, window_bounds = array<i64: 8, 7>}]} {
    %c0 = arith.constant 0 : index
    %c0_0 = arith.constant 0 : index
    %0 = memref.load %arg1[%c0, %c0_0] : memref<1x1xf32, #tpu.memory_space<smem>>
    %c0_1 = arith.constant 0 : index
    %c0_2 = arith.constant 0 : index
    %1 = vector.load %arg2[%c0_1, %c0_2] : memref<8x16xf32, #tpu.memory_space<vmem>>, vector<8x16xf32>
    %c0_3 = arith.constant 0 : index
    %c0_4 = arith.constant 0 : index
    %2 = vector.load %arg3[%c0_3, %c0_4] : memref<16x7xf32, #tpu.memory_space<vmem>>, vector<16x7xf32>
    %cst = arith.constant dense<0.000000e+00> : vector<8x7xf32>
    %3 = tpu.matmul %1, %2, %cst {dimension_numbers = #tpu.dot_dimension_numbers<[1], [0], [0], [1], [0, 0, 1, 1], [], []>} : vector<8x16xf32>, vector<16x7xf32>, vector<8x7xf32> -> vector<8x7xf32>
    %c0_5 = arith.constant 0 : index
    %c0_6 = arith.constant 0 : index
    %4 = vector.load %arg4[%c0_5, %c0_6] : memref<1x7xf32, #tpu.memory_space<vmem>>, vector<1x7xf32>
    %5 = vector.broadcast %4 : vector<1x7xf32> to vector<8x7xf32>
    %6 = arith.addf %3, %5 : vector<8x7xf32>
    %7 = vector.broadcast %0 : f32 to vector<8x7xf32>
    %8 = arith.mulf %7, %6 : vector<8x7xf32>
    %9 = math.absf %8 : vector<8x7xf32>
    %cst_7 = arith.constant 0.000000e+00 : f32
    %10 = vector.broadcast %cst_7 : f32 to vector<8x7xf32>
    %11 = arith.subf %10, %9 : vector<8x7xf32>
    %12 = math.exp %11 : vector<8x7xf32>
    %cst_8 = arith.constant 0.000000e+00 : f32
    %13 = vector.broadcast %cst_8 : f32 to vector<8x7xf32>
    %14 = arith.cmpf oge, %8, %13 : vector<8x7xf32>
    %cst_9 = arith.constant 1.000000e+00 : f32
    %15 = vector.broadcast %cst_9 : f32 to vector<8x7xf32>
    %16 = arith.select %14, %12, %15 : vector<8x7xi1>, vector<8x7xf32>
    %cst_10 = arith.constant 1.000000e+00 : f32
    %17 = vector.broadcast %cst_10 : f32 to vector<8x7xf32>
    %18 = arith.addf %17, %12 : vector<8x7xf32>
    %19 = arith.divf %16, %18 : vector<8x7xf32>
    %c0_11 = arith.constant 0 : index
    %c0_12 = arith.constant 0 : index
    %20 = vector.load %arg5[%c0_11, %c0_12] : memref<8x7xf32, #tpu.memory_space<vmem>>, vector<8x7xf32>
    tpu.vector_store %arg5[%c0_11, %c0_12], %19 {strides = array<i32>} : memref<8x7xf32, #tpu.memory_space<vmem>>, vector<8x7xf32>,
    return
  }
  func.func @transform_0(%arg0: i32) -> (i32, i32) {
    %c0_i32 = arith.constant 0 : i32
    %c0_i32_0 = arith.constant 0 : i32
    %c0_i32_1 = arith.constant 0 : i32
    return %c0_i32, %c0_i32_0 : i32, i32
  }
  func.func @transform_1(%arg0: i32) -> (i32, i32) {
    %c0_i32 = arith.constant 0 : i32
    %c0_i32_0 = arith.constant 0 : i32
    return %arg0, %c0_i32 : i32, i32
  }
  func.func @transform_2(%arg0: i32) -> (i32, i32) {
    %c0_i32 = arith.constant 0 : i32
    %c0_i32_0 = arith.constant 0 : i32
    %c0_i32_1 = arith.constant 0 : i32
    return %c0_i32, %c0_i32_0 : i32, i32
  }
  func.func @transform_3(%arg0: i32) -> (i32, i32) {
    %c0_i32 = arith.constant 0 : i32
    %c0_i32_0 = arith.constant 0 : i32
    %c0_i32_1 = arith.constant 0 : i32
    return %c0_i32, %c0_i32_0 : i32, i32
  }
  func.func @transform_4(%arg0: i32) -> (i32, i32) {
    %c0_i32 = arith.constant 0 : i32
    %c0_i32_0 = arith.constant 0 : i32
    return %arg0, %c0_i32 : i32, i32
  }
}

</mosaic_0001>

<bundles_post_ra>
// kernel: tpu_custom_call.1
= control target key start
LH: loop header
LB: loop body
LE: loop exit
PB: predicated region body
PF: predicated region fallthrough
CT: control target
= control target key end

     0   :  { %vm27_vm0 = vcmask 130048   ;;  %s170_s0 = inlined_call_operand.<no memory space> [shape: f32[1,1], index: 0, kind: input, shape index: {}]   ;;  %s171_s1 = inlined_call_operand.vmem [shape: f32[8,16], index: 1, kind: input, shape index: {}]   ;;  %s172_s2 = inlined_call_operand.vmem [shape: f32[16,7], index: 2, kind: input, shape index: {}]   ;;  %s173_s3 = inlined_call_operand.vmem [shape: f32[1,7], index: 3, kind: input, shape index: {}]   ;;  %s174_s4 = inlined_call_operand.hbm [shape: f32[8,7], index: 4, kind: output, shape index: {}]  }
   0x1   :  { %v22_v0 = vld [vmem:[%s172_s2 + $0x8] sm:$0xff]  ;;  %v21_v1 = vld [vmem:[%s172_s2] sm:$0xff] }
   0x2   :  { %45 = vmatpush.msra.mxu0 %v22_v0  ;;  %v20_v2 = vld [vmem:[%s171_s1] sm:$0xff] }
   0x3   :  { %10 = vsyncpa [#allocation4], 0  ;;  %v95_v3 = vld [vmem:[%s173_s3] ss:$0 sm:$0xff]  ;;  %v51_v5 = vstv %s170_s0  ;;  %s126_s0 = smov [#allocation3]   ;;  %s84_s25 = sshll.u32 %s174_s4, 4  ;;  %s85_s25 = int_to_ptr.hbm [resolvable:$true] %s84_s25 }
   0x4   :  { %46 = vmatpush.msra.mxu0 %v21_v1  ;;  %s82_s1 = sshll.u32 %s126_s0, 4  ;;  %vm75_vm6 = vcmask 56320   ;;  %s83_s1 = int_to_ptr.vmem [resolvable:$true] %s82_s1 }
   0x5   :  { %93 = vmatmul.msk.f32.vlgmr.msra.gmra.mxu0 %vm27_vm0, %v20_v2 }
  0x82   :  { %v48_v4 = vpop.f32.mrf.mxu0 }
  0x83   :  { %v49_v6 = vadd.f32 %v95_v3, %v48_v4 }
  0x85   :  { %v52_v7 = vmul.f32 %v51_v5, %v49_v6 }
  0x87   :  { %v53_v8 = vand.u32 2147483647, %v52_v7  ;;  %vm57_vm4 = vcmp.ge.f32.partialorder %v52_v7, 0.0 }
  0x89   :  { %v54_v9 = vsub.f32 0.0, %v53_v8 }
  0x8b   :  { %v55_v10 = vmul.f32 1.442695, %v54_v9 }
  0x8d   :  { %96 = vpow2.f32 %v55_v10 }
  0x93   :  { %v97_v11 = vpop.eup %96 }
  0x94   :  { %v59_v12 = vadd.f32 1.0, %v97_v11  ;;  %v58_v22 = vsel %vm57_vm4, %v97_v11, 1.0 }
  0x96   :  { %98 = vrcp.f32 %v59_v12  ;;  %v71_v16 = vand.u32 2147483648, %v59_v12  ;;  %v69_v18 = vand.u32 2147483647, %v59_v12  ;;  %vm65_vm2 = vweird.f32 %v59_v12 }
  0x98   :  { %v72_v20 = vor.u32 1.1754944e-38, %v71_v16  ;;  %vm70_vm5 = vcmp.eq.f32.partialorder %v69_v18, 8.507059e+37 }
  0x9c   :  { %v99_v13 = vpop.eup %98 }
  0x9d   :  { %v61_v14 = vmul.f32 %v99_v13, %v59_v12  ;;  %vm66_vm1 = vweird.f32 %v99_v13 }
  0x9e   :  { %vm67_vm3 = vmor %vm65_vm2, %vm66_vm1 }
  0x9f   :  { %v62_v15 = vsub.f32 1.0, %v61_v14 }
  0xa1   :  { %v63_v17 = vmul.f32 %v99_v13, %v62_v15 }
  0xa3   :  { %v64_v19 = vadd.f32 %v99_v13, %v63_v17 }
  0xa5   :  { %v68_v21 = vsel %vm67_vm3, %v99_v13, %v64_v19 }
  0xa6   :  { %v73_v23 = vsel %vm70_vm5, %v72_v20, %v68_v21 }
  0xa7   :  { %v74_v24 = vmul.f32 %v73_v23, %v58_v22 }
  0xa9   :  { %76 = vst.msk [vmem:[#allocation3] sm:$0xff] %vm75_vm6, %v74_v24 }
  0xaa   :  { %87 = dma.vmem_to_hbm [thread:$0]  %s83_s1, 128, %s85_s25, [#allocation4]  }
  0xab   :  { %124 = dma.done.wait [#allocation4], 128  }
  0xac   :  { %125 = vsyncadd [#allocation4], 4294967168 }
  0xad   :  { %92 = vsyncpa [#allocation4], 1 }

</bundles_post_ra>
